<compile_context>
chip_gen: v5e
topology: v5e:2x2
jax: 0.10.0
libtpu: 0.0.40
codegen_flags: <defaults>
</compile_context>

<pallas_src>
import math
import functools

import jax
import jax.numpy as jnp
from jax.experimental import pallas as pl
from jax.experimental.pallas import tpu as pltpu


def _fc_sigmoid_kernel(x_ref, w_ref, b_ref, o_ref, acc_ref, *, weight_gain):
    # x_ref: (tm, tk)  w_ref: (tn, tk)  b_ref: (1, tn)  o_ref: (tm, tn)
    # acc_ref: (tm, tn) f32 scratch, resident across the K grid axis.
    k = pl.program_id(2)

    @pl.when(k == 0)
    def _():
        acc_ref[...] = jnp.zeros_like(acc_ref)

    # Contract last dims of x and w (x @ w.T) without materializing a transpose.
    acc_ref[...] += jax.lax.dot_general(
        x_ref[...],
        w_ref[...],
        dimension_numbers=(((1,), (1,)), ((), ())),
        preferred_element_type=jnp.float32,
    )

    # Epilogue once per output tile: scale, bias, sigmoid, store.
    @pl.when(k == pl.num_programs(2) - 1)
    def _():
        r = acc_ref[...] * jnp.float32(weight_gain)
        r = r + b_ref[...].astype(jnp.float32)  # bias pre-scaled by bias_gain
        o_ref[...] = jax.nn.sigmoid(r).astype(o_ref.dtype)


def _round_up(x, m):
    return ((x + m - 1) // m) * m


def fully_connected_sigmoid(x, weight, bias, *, lr_multiplier=1.0):
    """x: [M, K], weight: [N, K] (PyTorch layout), bias: [N] -> [M, N]."""
    M, K = x.shape
    N, K2 = weight.shape
    assert K == K2
    weight_gain = lr_multiplier / math.sqrt(K)
    bias_gain = lr_multiplier
    dtype = x.dtype

    # Tile sizes: lane-dense (multiples of 128 on the lane dim, 8 on sublane),
    # sized conservatively so double-buffered tiles + acc fit comfortably in
    # scoped VMEM on all of v5e / v6e / v7x.
    tm = min(256, _round_up(M, 8))
    tn = min(256, _round_up(N, 128))
    tk = min(512, _round_up(K, 128))

    Mp = _round_up(M, tm)
    Np = _round_up(N, tn)
    Kp = _round_up(K, tk)

    x_p = x
    if (Mp, Kp) != (M, K):
        x_p = jnp.pad(x_p, ((0, Mp - M), (0, Kp - K)))

    w_p = weight.astype(dtype)
    if (Np, Kp) != (N, K):
        w_p = jnp.pad(w_p, ((0, Np - N), (0, Kp - K)))

    # Pre-scale the bias by bias_gain once; keep it as a lane-dense [1, Np] row.
    b_p = (bias.astype(dtype) * jnp.asarray(bias_gain, dtype)).reshape(1, N)
    if Np != N:
        b_p = jnp.pad(b_p, ((0, 0), (0, Np - N)))

    grid = (Mp // tm, Np // tn, Kp // tk)

    kernel = functools.partial(_fc_sigmoid_kernel, weight_gain=weight_gain)

    out = pl.pallas_call(
        kernel,
        out_shape=jax.ShapeDtypeStruct((Mp, Np), dtype),
        grid=grid,
        in_specs=[
            pl.BlockSpec((tm, tk), lambda i, j, k: (i, k)),   # x tile
            pl.BlockSpec((tn, tk), lambda i, j, k: (j, k)),   # weight tile
            pl.BlockSpec((1, tn), lambda i, j, k: (0, j)),    # bias tile (K-resident)
        ],
        out_specs=pl.BlockSpec((tm, tn), lambda i, j, k: (i, j)),
        scratch_shapes=[pltpu.VMEM((tm, tn), jnp.float32)],
        compiler_params=pltpu.CompilerParams(
            dimension_semantics=("parallel", "parallel", "arbitrary"),
            vmem_limit_bytes=32 * 1024 * 1024,
        ),
    )(x_p, w_p, b_p)

    if (Mp, Np) != (M, N):
        out = out[:M, :N]
    return out


def reference(x, weight, bias, *, lr_multiplier=1.0):
    weight_gain = lr_multiplier / math.sqrt(x.shape[1])
    bias_gain = lr_multiplier
    w = weight.astype(x.dtype) * weight_gain
    b = bias.astype(x.dtype) * bias_gain
    return jax.nn.sigmoid(x @ w.T + b[None, :])


if __name__ == "__main__":
    key = jax.random.PRNGKey(0)

    # Case 1: small, matches the original demo (batch=8, in=32, out=32).
    kx, kw, key = jax.random.split(key, 3)
    x1 = jax.random.normal(kx, (8, 32), dtype=jnp.float32)
    w1 = jax.random.normal(kw, (32, 32), dtype=jnp.float32)   # torch layout [out, in]
    b1 = jnp.zeros((32,), dtype=jnp.float32)                  # bias_init = 0
    out1 = jax.block_until_ready(fully_connected_sigmoid(x1, w1, b1, lr_multiplier=1.0))
    ref1 = reference(x1, w1, b1, lr_multiplier=1.0)
    assert out1.shape == (8, 32)
    assert jnp.allclose(out1, ref1, atol=1e-5, rtol=1e-5), "mismatch vs reference (case 1)"

    # Case 2: non-aligned shapes exercising padding + multi-tile grid.
    kx, kw, kb = jax.random.split(key, 3)
    x2 = jax.random.normal(kx, (70, 300), dtype=jnp.float32)
    w2 = jax.random.normal(kw, (200, 300), dtype=jnp.float32)
    b2 = jax.random.normal(kb, (200,), dtype=jnp.float32)
    out2 = jax.block_until_ready(fully_connected_sigmoid(x2, w2, b2, lr_multiplier=1.0))
    ref2 = reference(x2, w2, b2, lr_multiplier=1.0)
    assert out2.shape == (70, 200)
    assert jnp.allclose(out2, ref2, atol=1e-5, rtol=1e-5), "mismatch vs reference (case 2)"

    print("KERNEL_OK")
</pallas_src>

<mosaic_0001>
module attributes {stable_mosaic.version = 11 : i64} {
  func.func @_fc_sigmoid_kernel(%arg0: i32, %arg1: i32, %arg2: i32, %arg3: memref<8x128xf32, #tpu.memory_space<vmem>>, %arg4: memref<128x128xf32, #tpu.memory_space<vmem>>, %arg5: memref<1x128xf32, #tpu.memory_space<vmem>>, %arg6: memref<8x128xf32, #tpu.memory_space<vmem>>, %arg7: memref<8x128xf32, #tpu.memory_space<vmem>>) attributes {dimension_semantics = [#tpu.dimension_semantics<parallel>, #tpu.dimension_semantics<parallel>, #tpu.dimension_semantics<arbitrary>], iteration_bounds = array<i64: 1, 1, 1>, scalar_prefetch = 0 : i64, scratch_operands = 1 : i64, tpu.core_type = #tpu.core_type<tc>, window_params = [{transform_indices = @transform_0, window_bounds = array<i64: 8, 128>}, {transform_indices = @transform_1, window_bounds = array<i64: 128, 128>}, {transform_indices = @transform_2, window_bounds = array<i64: 1, 128>}, {transform_indices = @transform_3, window_bounds = array<i64: 8, 128>}]} {
    %c0_i32 = arith.constant 0 : i32
    %0 = arith.cmpi eq, %arg2, %c0_i32 : i32
    %1 = arith.extui %0 : i1 to i32
    %c0_i32_0 = arith.constant 0 : i32
    %2 = arith.cmpi ne, %1, %c0_i32_0 : i32
    scf.if %2 {
      %cst_10 = arith.constant 0.000000e+00 : f32
      %12 = vector.broadcast %cst_10 : f32 to vector<8x128xf32>
      %c0_11 = arith.constant 0 : index
      %c0_12 = arith.constant 0 : index
      %13 = vector.load %arg7[%c0_11, %c0_12] : memref<8x128xf32, #tpu.memory_space<vmem>>, vector<8x128xf32>
      tpu.vector_store %arg7[%c0_11, %c0_12], %12 {strides = array<i32>} : memref<8x128xf32, #tpu.memory_space<vmem>>, vector<8x128xf32>,
    } else {
    }
    %c0 = arith.constant 0 : index
    %c0_1 = arith.constant 0 : index
    %3 = vector.load %arg7[%c0, %c0_1] : memref<8x128xf32, #tpu.memory_space<vmem>>, vector<8x128xf32>
    %c0_2 = arith.constant 0 : index
    %c0_3 = arith.constant 0 : index
    %4 = vector.load %arg3[%c0_2, %c0_3] : memref<8x128xf32, #tpu.memory_space<vmem>>, vector<8x128xf32>
    %c0_4 = arith.constant 0 : index
    %c0_5 = arith.constant 0 : index
    %5 = vector.load %arg4[%c0_4, %c0_5] : memref<128x128xf32, #tpu.memory_space<vmem>>, vector<128x128xf32>
    %cst = arith.constant dense<0.000000e+00> : vector<8x128xf32>
    %6 = tpu.matmul %4, %5, %cst {dimension_numbers = #tpu.dot_dimension_numbers<[1], [1], [0], [0], [0, 0, 1, 0], [], []>} : vector<8x128xf32>, vector<128x128xf32>, vector<8x128xf32> -> vector<8x128xf32>
    %7 = arith.addf %3, %6 : vector<8x128xf32>
    %c0_6 = arith.constant 0 : index
    %c0_7 = arith.constant 0 : index
    %8 = vector.load %arg7[%c0_6, %c0_7] : memref<8x128xf32, #tpu.memory_space<vmem>>, vector<8x128xf32>
    tpu.vector_store %arg7[%c0_6, %c0_7], %7 {strides = array<i32>} : memref<8x128xf32, #tpu.memory_space<vmem>>, vector<8x128xf32>,
    %c0_i32_8 = arith.constant 0 : i32
    %9 = arith.cmpi eq, %arg2, %c0_i32_8 : i32
    %10 = arith.extui %9 : i1 to i32
    %c0_i32_9 = arith.constant 0 : i32
    %11 = arith.cmpi ne, %10, %c0_i32_9 : i32
    scf.if %11 {
      %c0_10 = arith.constant 0 : index
      %c0_11 = arith.constant 0 : index
      %12 = vector.load %arg7[%c0_10, %c0_11] : memref<8x128xf32, #tpu.memory_space<vmem>>, vector<8x128xf32>
      %cst_12 = arith.constant 0.176776692 : f32
      %13 = vector.broadcast %cst_12 : f32 to vector<8x128xf32>
      %14 = arith.mulf %12, %13 : vector<8x128xf32>
      %c0_13 = arith.constant 0 : index
      %c0_14 = arith.constant 0 : index
      %15 = vector.load %arg5[%c0_13, %c0_14] : memref<1x128xf32, #tpu.memory_space<vmem>>, vector<1x128xf32>
      %16 = vector.broadcast %15 : vector<1x128xf32> to vector<8x128xf32>
      %17 = arith.addf %14, %16 : vector<8x128xf32>
      %18 = arith.negf %17 : vector<8x128xf32>
      %19 = math.exp %18 : vector<8x128xf32>
      %cst_15 = arith.constant 1.000000e+00 : f32
      %20 = vector.broadcast %cst_15 : f32 to vector<8x128xf32>
      %21 = arith.addf %20, %19 : vector<8x128xf32>
      %22 = arith.divf %20, %21 : vector<8x128xf32>
      %c0_16 = arith.constant 0 : index
      %c0_17 = arith.constant 0 : index
      %23 = vector.load %arg6[%c0_16, %c0_17] : memref<8x128xf32, #tpu.memory_space<vmem>>, vector<8x128xf32>
      tpu.vector_store %arg6[%c0_16, %c0_17], %22 {strides = array<i32>} : memref<8x128xf32, #tpu.memory_space<vmem>>, vector<8x128xf32>,
    } else {
    }
    return
  }
  func.func @transform_0(%arg0: i32, %arg1: i32, %arg2: i32) -> (i32, i32) {
    %c0_i32 = arith.constant 0 : i32
    return %arg0, %arg2 : i32, i32
  }
  func.func @transform_1(%arg0: i32, %arg1: i32, %arg2: i32) -> (i32, i32) {
    %c0_i32 = arith.constant 0 : i32
    return %arg1, %arg2 : i32, i32
  }
  func.func @transform_2(%arg0: i32, %arg1: i32, %arg2: i32) -> (i32, i32) {
    %c0_i32 = arith.constant 0 : i32
    %c0_i32_0 = arith.constant 0 : i32
    return %c0_i32, %arg1 : i32, i32
  }
  func.func @transform_3(%arg0: i32, %arg1: i32, %arg2: i32) -> (i32, i32) {
    %c0_i32 = arith.constant 0 : i32
    return %arg0, %arg1 : i32, i32
  }
}

</mosaic_0001>

<bundles_post_ra>
// kernel: tpu_custom_call.1
= control target key start
LH: loop header
LB: loop body
LE: loop exit
PB: predicated region body
PF: predicated region fallthrough
CT: control target
= control target key end

     0   :  { %8 = vsyncpa [#allocation4], 0  ;;  %s264_s0 = inlined_call_operand.hbm [shape: f32[8,128], index: 0, kind: input, shape index: {}]   ;;  %s265_s1 = inlined_call_operand.hbm [shape: f32[128,128], index: 1, kind: input, shape index: {}]   ;;  %s266_s2 = inlined_call_operand.vmem [shape: f32[1,128], index: 2, kind: input, shape index: {}]   ;;  %s267_s3 = inlined_call_operand.hbm [shape: f32[8,128], index: 3, kind: output, shape index: {}]  }
   0x1   :  { %9 = vsyncpa [#allocation7], 0 }
   0x2   :  { %10 = vsyncpa [#allocation5], 0  ;;  %s16_s14 = sshll.u32 %s264_s0, 4  ;;  %s227_s15 = smov [#allocation3]   ;;  %s17_s14 = int_to_ptr.hbm [resolvable:$true] %s16_s14 }
   0x3   :  { %s18_s16 = sshll.u32 %s227_s15, 4  ;;  %s26_s19 = sshll.u32 %s265_s1, 4  ;;  %s19_s16 = int_to_ptr.vmem [resolvable:$true] %s18_s16  ;;  %s27_s19 = int_to_ptr.hbm [resolvable:$true] %s26_s19 }
   0x4   :  { %21 = dma.hbm_to_vmem [thread:$0]  %s17_s14, 128, %s19_s16, [#allocation4]  }
   0x5   :  { %s228_s20 = smov [#allocation6]   ;;  %s229_s22 = smov 128  }
   0x6   :  { %s28_s21 = sshll.u32 %s228_s20, 4  ;;  %s230_s23 = smov 8   ;;  %s29_s21 = int_to_ptr.vmem [resolvable:$true] %s28_s21 }
   0x7   :  { %34 = dma.hbm_to_vmem [thread:$0]  %s27_s19, 2048, %s29_s21, [#allocation7], %s229_s22, %s229_s22, %s230_s23  }
   0x8   :  { %221 = dma.done.wait [#allocation4], 128  }
   0x9   :  { %222 = vsyncadd [#allocation4], 4294967168 }
   0xa   :  { %223 = dma.done.wait [#allocation7], 2048  }
   0xb   :  { %224 = vsyncadd [#allocation7], 4294965248  ;;  %v67_v0 = vld [vmem:[#allocation6 + $0x78] sm:$0xff]  ;;  %v66_v1 = vld [vmem:[#allocation6 + $0x70] sm:$0xff]  ;;  %s231_s24 = smov [#allocation8]  }
   0xc   :  { %68 = vmatpush.xpose.msra.mxu0 %v67_v0  ;;  %v65_v2 = vld [vmem:[#allocation6 + $0x68] sm:$0xff]  ;;  %v64_v3 = vld [vmem:[#allocation6 + $0x60] sm:$0xff]  ;;  %v63_v4 = vld [vmem:[#allocation6 + $0x58] sm:$0xff]  ;;  %s125_s25 = sshll.u32 %s231_s24, 4  ;;  %s126_s25 = int_to_ptr.vmem [resolvable:$true] %s125_s25 }
   0xd   :  { %v62_v5 = vld [vmem:[#allocation6 + $0x50] sm:$0xff]  ;;  %v61_v6 = vld [vmem:[#allocation6 + $0x48] sm:$0xff]  ;;  %v60_v7 = vld [vmem:[#allocation6 + $0x40] sm:$0xff] }
   0xe   :  { %v59_v8 = vld [vmem:[#allocation6 + $0x38] sm:$0xff]  ;;  %v58_v9 = vld [vmem:[#allocation6 + $0x30] sm:$0xff]  ;;  %v57_v10 = vld [vmem:[#allocation6 + $0x28] sm:$0xff] }
   0xf   :  { %v56_v11 = vld [vmem:[#allocation6 + $0x20] sm:$0xff]  ;;  %v55_v12 = vld [vmem:[#allocation6 + $0x18] sm:$0xff]  ;;  %v54_v13 = vld [vmem:[#allocation6 + $0x10] sm:$0xff] }
  0x10   :  { %69 = vmatpush.xpose.msra.mxu0 %v66_v1  ;;  %v53_v14 = vld [vmem:[#allocation6 + $0x8] sm:$0xff]  ;;  %v52_v15 = vld [vmem:[#allocation6] sm:$0xff]  ;;  %v51_v16 = vld [vmem:[#allocation3] sm:$0xff] }
  0x11   :  { %v144_v17 = vld [vmem:[%s266_s2] ss:$0 sm:$0xff]  ;;  %s127_s2 = sshll.u32 %s267_s3, 4  ;;  %s128_s2 = int_to_ptr.hbm [resolvable:$true] %s127_s2 }
  0x14   :  { %70 = vmatpush.xpose.msra.mxu0 %v65_v2 }
  0x18   :  { %71 = vmatpush.xpose.msra.mxu0 %v64_v3 }
  0x1c   :  { %72 = vmatpush.xpose.msra.mxu0 %v63_v4 }
  0x20   :  { %73 = vmatpush.xpose.msra.mxu0 %v62_v5 }
  0x24   :  { %74 = vmatpush.xpose.msra.mxu0 %v61_v6 }
  0x28   :  { %75 = vmatpush.xpose.msra.mxu0 %v60_v7 }
  0x2c   :  { %76 = vmatpush.xpose.msra.mxu0 %v59_v8 }
  0x30   :  { %77 = vmatpush.xpose.msra.mxu0 %v58_v9 }
  0x34   :  { %78 = vmatpush.xpose.msra.mxu0 %v57_v10 }
  0x38   :  { %79 = vmatpush.xpose.msra.mxu0 %v56_v11 }
  0x3c   :  { %80 = vmatpush.xpose.msra.mxu0 %v55_v12 }
  0x40   :  { %81 = vmatpush.xpose.msra.mxu0 %v54_v13 }
  0x44   :  { %82 = vmatpush.xpose.msra.mxu0 %v53_v14 }
  0x48   :  { %83 = vmatpush.xpose.msra.mxu0 %v52_v15 }
  0x4b   :  { %84 = vmatmul.f32.vlgmr.msra.gmra.mxu0 %v51_v16 }
  0xc8   :  { %v85_v18 = vpop.f32.mrf.mxu0 }
  0xc9   :  { %v94_v19 = vmul.f32 0.17677669, %v85_v18 }
  0xcb   :  { %v99_v20 = vadd.f32 %v144_v17, %v94_v19 }
  0xcd   :  { %v138_v21 = vmul.f32 -1.442695, %v99_v20 }
  0xcf   :  { %145 = vpow2.f32 %v138_v21 }
  0xd5   :  { %v146_v22 = vpop.eup %145 }
  0xd6   :  { %v103_v23 = vadd.f32 1.0, %v146_v22 }
  0xd8   :  { %147 = vrcp.f32 %v103_v23  ;;  %v115_v27 = vand.u32 2147483648, %v103_v23  ;;  %v113_v29 = vand.u32 2147483647, %v103_v23  ;;  %vm109_vm1 = vweird.f32 %v103_v23 }
  0xda   :  { %v116_v31 = vor.u32 1.1754944e-38, %v115_v27  ;;  %vm114_vm3 = vcmp.eq.f32.partialorder %v113_v29, 8.507059e+37 }
  0xde   :  { %v148_v24 = vpop.eup %147 }
  0xdf   :  { %v105_v25 = vmul.f32 %v148_v24, %v103_v23  ;;  %vm110_vm0 = vweird.f32 %v148_v24 }
  0xe0   :  { %vm111_vm2 = vmor %vm109_vm1, %vm110_vm0 }
  0xe1   :  { %v106_v26 = vsub.f32 1.0, %v105_v25 }
  0xe3   :  { %v107_v28 = vmul.f32 %v148_v24, %v106_v26 }
  0xe5   :  { %v108_v30 = vadd.f32 %v148_v24, %v107_v28 }
  0xe7   :  { %v112_v32 = vsel %vm111_vm2, %v148_v24, %v108_v30 }
  0xe8   :  { %v117_v33 = vsel %vm114_vm3, %v116_v31, %v112_v32 }
  0xe9   :  { %119 = vst [vmem:[#allocation8] sm:$0xff] %v117_v33 }
  0xea   :  { %130 = dma.vmem_to_hbm [thread:$0]  %s126_s25, 128, %s128_s2, [#allocation5]  }
  0xeb   :  { %225 = dma.done.wait [#allocation5], 128  }
  0xec   :  { %226 = vsyncadd [#allocation5], 4294967168 }
  0xed   :  { %135 = vsyncpa [#allocation4], 1 }
  0xee   :  { %136 = vsyncpa [#allocation7], 1 }
  0xef   :  { %137 = vsyncpa [#allocation5], 1 }

</bundles_post_ra>
